<compile_context>
chip_gen: v5e
topology: v5e:2x2
jax: 0.10.0
libtpu: 0.0.40
codegen_flags: <defaults>
</compile_context>

<pallas_src>
import math

import jax
import jax.numpy as jnp
from jax.experimental import pallas as pl
from jax.experimental.pallas import tpu as pltpu

# Folded constants (computed host-side, no device work at import time).
_C = 1.0 - math.exp(-0.25)        # 1 - exp(-1/4)
_INV_SQRT2 = 2.0 ** -0.5          # 2^(x - 0.5) == 2^-0.5 * 2^x


def _eyelu_kernel(x_ref, o_ref):
    # exp(-(2**(x - 0.5))) + (1 - exp(-1/4)), constants folded.
    # f32 compute: clean on v5e (no bf16 VPU/EUP) and matches the reference;
    # the 2 EUP pushes per element are far under the HBM roofline everywhere,
    # so no further micro-optimization of the math is useful.
    x = x_ref[...].astype(jnp.float32)
    y = jnp.exp(-_INV_SQRT2 * jnp.exp2(x)) + _C
    o_ref[...] = y.astype(o_ref.dtype)


def eyelu(x, *, target_block_bytes=4 << 20, donate=False):
    """Elementwise EyeLu over an arbitrary-shaped array (NCHW or any layout)."""
    orig_shape = x.shape
    orig_dtype = x.dtype
    total = x.size
    if total == 0:
        return x

    itemsize = jnp.dtype(orig_dtype).itemsize
    # Sublane packing: rows per fully packed vreg / DMA tile.
    sub = {4: 8, 2: 16, 1: 32}.get(itemsize, 8)

    # ---- choose a lane-dense 2-D slab (rows, cols), no padding if possible --
    cols = None
    # Pass 1: cols multiple of 128 AND fully packed sublanes.
    for c in (2048, 1024, 512, 256, 128):
        if total % c == 0 and (total // c) % sub == 0:
            cols = c
            break
    # Pass 2: cols multiple of 128 (partial sublane boundary handled by Pallas).
    if cols is None:
        for c in (2048, 1024, 512, 256, 128):
            if total % c == 0:
                cols = c
                break
    # Pass 3: ragged — largest divisor of total <= 2048; block the FULL lane
    # extent (legal even when not a multiple of 128) so no pad/slice pass.
    if cols is None:
        for c in range(min(2048, total), 0, -1):
            if total % c == 0:
                cols = c
                break

    pad = 0
    if cols >= 128 or cols == total:
        rows = total // cols
        x2d = x.reshape(rows, cols)
    else:
        # TODO(synk): pathological sizes (no divisor >= 128 under 2048, e.g.
        # large primes) still pay a pad + slice pass; an overlapping-last-block
        # manual-DMA kernel would remove it.
        cols = 1024
        rows = pl.cdiv(total, cols)
        pad = rows * cols - total
        x2d = jnp.pad(x.reshape(-1), (0, pad)).reshape(rows, cols)

    # ---- choose block rows ---------------------------------------------------
    if rows <= sub:
        tile_rows = rows                          # tiny: one full-extent block
    else:
        t = max(sub, target_block_bytes // (cols * itemsize))
        tile_rows = max(sub, (min(rows, t) // sub) * sub)
        # v7x has 2 TensorCores: ensure the "parallel" grid axis has >= 2 steps
        # on mid/large inputs so both cores get work.
        if pl.cdiv(rows, tile_rows) == 1 and rows >= 2 * sub:
            tile_rows = max(sub, (pl.cdiv(rows, 2) // sub) * sub)
        # Prefer a tile that divides rows exactly: every store stays an
        # unmasked lane-dense vst and every DMA is full-sized.
        if rows % tile_rows:
            lo = max(sub, tile_rows // 2)
            for cand in range(tile_rows - sub, lo - 1, -sub):
                if rows % cand == 0:
                    tile_rows = cand
                    break

    grid = (pl.cdiv(rows, tile_rows),)
    block_bytes = tile_rows * cols * itemsize
    # Double-buffered input + output (~4x block) plus headroom; explicit limit
    # so 4 MiB blocks are safe on v5e's 16 MiB scoped default and still well
    # under v7x's 64 MiB physical VMEM.
    vmem_limit = int(min(48 << 20, max(32 << 20, 6 * block_bytes)))

    extra = {}
    if donate:
        # Caller guarantees x2d's buffer may be overwritten (same shape/dtype):
        # avoids allocating a second full-size HBM buffer for large activations.
        extra["input_output_aliases"] = {0: 0}

    out2d = pl.pallas_call(
        _eyelu_kernel,
        out_shape=jax.ShapeDtypeStruct((rows, cols), orig_dtype),
        grid_spec=pltpu.PrefetchScalarGridSpec(
            num_scalar_prefetch=0,
            grid=grid,
            in_specs=[pl.BlockSpec((tile_rows, cols), lambda i: (i, 0))],
            out_specs=pl.BlockSpec((tile_rows, cols), lambda i: (i, 0)),
        ),
        compiler_params=pltpu.CompilerParams(
            dimension_semantics=("parallel",),
            vmem_limit_bytes=vmem_limit,
        ),
        cost_estimate=pl.CostEstimate(
            flops=3 * rows * cols,
            transcendentals=2 * rows * cols,
            bytes_accessed=2 * rows * cols * itemsize,
        ),
        **extra,
    )(x2d)

    if pad:
        return out2d.reshape(-1)[:total].reshape(orig_shape)
    return out2d.reshape(orig_shape)


def eyelu_ref(x):
    """Pure-JAX reference matching the PyTorch module exactly."""
    x = x - 0.5
    x = jnp.exp(-jnp.power(2.0, x))
    return x + 1.0 - jnp.exp(jnp.asarray(-1.0 / 4.0, x.dtype))


if __name__ == "__main__":
    # NCHW input consistent with conv-style activation usage (aligned path).
    x = jax.random.normal(jax.random.PRNGKey(0), (2, 4, 16, 16), dtype=jnp.float32)
    out = jax.block_until_ready(eyelu(x))
    ref = eyelu_ref(x)
    assert out.shape == x.shape and out.dtype == x.dtype
    assert jnp.allclose(out, ref, atol=1e-5, rtol=1e-5), (
        float(jnp.max(jnp.abs(out - ref)))
    )

    # Ragged shape: exercises the no-pad full-lane-extent path.
    x2 = jax.random.normal(jax.random.PRNGKey(1), (3, 5, 7, 11), dtype=jnp.float32)
    out2 = jax.block_until_ready(eyelu(x2))
    ref2 = eyelu_ref(x2)
    assert out2.shape == x2.shape and out2.dtype == x2.dtype
    assert jnp.allclose(out2, ref2, atol=1e-5, rtol=1e-5), (
        float(jnp.max(jnp.abs(out2 - ref2)))
    )

    # Mid-sized aligned shape: exercises multi-step grid (both v7x cores) and
    # exact-divisor tiling.
    x3 = jax.random.normal(jax.random.PRNGKey(2), (8, 32, 32, 32), dtype=jnp.float32)
    out3 = jax.block_until_ready(eyelu(x3))
    ref3 = eyelu_ref(x3)
    assert out3.shape == x3.shape and out3.dtype == x3.dtype
    assert jnp.allclose(out3, ref3, atol=1e-5, rtol=1e-5), (
        float(jnp.max(jnp.abs(out3 - ref3)))
    )

    print("KERNEL_OK")
</pallas_src>

<mosaic_0001>
module attributes {stable_mosaic.version = 11 : i64} {
  func.func @_eyelu_kernel(%arg0: i32, %arg1: memref<8x256xf32, #tpu.memory_space<vmem>>, %arg2: memref<8x256xf32, #tpu.memory_space<vmem>>) attributes {dimension_semantics = [#tpu.dimension_semantics<parallel>], iteration_bounds = array<i64: 1>, scalar_prefetch = 0 : i64, scratch_operands = 0 : i64, tpu.core_type = #tpu.core_type<tc>, window_params = [{transform_indices = @transform_0, window_bounds = array<i64: 8, 256>}, {transform_indices = @transform_1, window_bounds = array<i64: 8, 256>}]} {
    %c0 = arith.constant 0 : index
    %c0_0 = arith.constant 0 : index
    %0 = vector.load %arg1[%c0, %c0_0] : memref<8x256xf32, #tpu.memory_space<vmem>>, vector<8x256xf32>
    %1 = math.exp2 %0 : vector<8x256xf32>
    %cst = arith.constant -0.707106769 : f32
    %2 = vector.broadcast %cst : f32 to vector<8x256xf32>
    %3 = arith.mulf %2, %1 : vector<8x256xf32>
    %4 = math.exp %3 : vector<8x256xf32>
    %cst_1 = arith.constant 0.221199214 : f32
    %5 = vector.broadcast %cst_1 : f32 to vector<8x256xf32>
    %6 = arith.addf %4, %5 : vector<8x256xf32>
    %c0_2 = arith.constant 0 : index
    %c0_3 = arith.constant 0 : index
    %7 = vector.load %arg2[%c0_2, %c0_3] : memref<8x256xf32, #tpu.memory_space<vmem>>, vector<8x256xf32>
    tpu.vector_store %arg2[%c0_2, %c0_3], %6 {strides = array<i32>} : memref<8x256xf32, #tpu.memory_space<vmem>>, vector<8x256xf32>,
    return
  }
  func.func @transform_0(%arg0: i32) -> (i32, i32) {
    %c0_i32 = arith.constant 0 : i32
    %c0_i32_0 = arith.constant 0 : i32
    return %arg0, %c0_i32 : i32, i32
  }
  func.func @transform_1(%arg0: i32) -> (i32, i32) {
    %c0_i32 = arith.constant 0 : i32
    %c0_i32_0 = arith.constant 0 : i32
    return %arg0, %c0_i32 : i32, i32
  }
}

</mosaic_0001>

<bundles_post_ra>
// kernel: tpu_custom_call.1
= control target key start
LH: loop header
LB: loop body
LE: loop exit
PB: predicated region body
PF: predicated region fallthrough
CT: control target
= control target key end

     0   :  { %6 = vsyncpa [#allocation3], 0  ;;  %s134_s0 = inlined_call_operand.hbm [shape: f32[8,256], index: 0, kind: input, shape index: {}]   ;;  %s135_s1 = inlined_call_operand.hbm [shape: f32[8,256], index: 1, kind: output, shape index: {}]  }
   0x1   :  { %7 = vsyncpa [#allocation4], 0  ;;  %s13_s8 = sshll.u32 %s134_s0, 4  ;;  %s116_s9 = smov [#allocation2]   ;;  %s14_s8 = int_to_ptr.hbm [resolvable:$true] %s13_s8 }
   0x2   :  { %s15_s10 = sshll.u32 %s116_s9, 4  ;;  %s16_s10 = int_to_ptr.vmem [resolvable:$true] %s15_s10 }
   0x3   :  { %18 = dma.hbm_to_vmem [thread:$0]  %s14_s8, 256, %s16_s10, [#allocation3]  }
   0x4   :  { %112 = dma.done.wait [#allocation3], 256  }
   0x5   :  { %113 = vsyncadd [#allocation3], 4294967040  ;;  %v23_v0 = vld [vmem:[#allocation2] sm:$0xff]  ;;  %v24_v1 = vld [vmem:[#allocation2 + $0x8] sm:$0xff]  ;;  %s117_s0 = smov [#allocation5]   ;;  %s44_s14 = sshll.u32 %s135_s1, 4  ;;  %s45_s14 = int_to_ptr.hbm [resolvable:$true] %s44_s14 }
   0x6   :  { %56 = vpow2.f32 %v23_v0  ;;  %s42_s11 = sshll.u32 %s117_s0, 4  ;;  %s43_s11 = int_to_ptr.vmem [resolvable:$true] %s42_s11 }
   0x7   :  { %58 = vpow2.f32 %v24_v1 }
   0xc   :  { %v57_v2 = vpop.eup %56 }
   0xd   :  { %v59_v3 = vpop.eup %58  ;;  %v27_v4 = vmul.f32 -0.70710677, %v57_v2 }
   0xe   :  { %v28_v5 = vmul.f32 -0.70710677, %v59_v3 }
   0xf   :  { %v29_v6 = vmul.f32 1.442695, %v27_v4 }
  0x10   :  { %v31_v7 = vmul.f32 1.442695, %v28_v5 }
  0x11   :  { %60 = vpow2.f32 %v29_v6 }
  0x12   :  { %62 = vpow2.f32 %v31_v7 }
  0x17   :  { %v61_v8 = vpop.eup %60 }
  0x18   :  { %v63_v9 = vpop.eup %62  ;;  %v33_v10 = vadd.f32 0.22119921, %v61_v8 }
  0x19   :  { %v34_v11 = vadd.f32 0.22119921, %v63_v9 }
  0x1a   :  { %35 = vst [vmem:[#allocation5] sm:$0xff] %v33_v10 }
  0x1b   :  { %36 = vst [vmem:[#allocation5 + $0x8] sm:$0xff] %v34_v11 }
  0x1c   :  { %47 = dma.vmem_to_hbm [thread:$0]  %s43_s11, 256, %s45_s14, [#allocation4]  }
  0x1d   :  { %114 = dma.done.wait [#allocation4], 256  }
  0x1e   :  { %115 = vsyncadd [#allocation4], 4294967040 }
  0x1f   :  { %52 = vsyncpa [#allocation3], 1 }
  0x20   :  { %53 = vsyncpa [#allocation4], 1 }

</bundles_post_ra>
